<compile_context>
chip_gen: v6e
topology: v6e:2x2x1
jax: 0.10.0
libtpu: 0.0.40
codegen_flags: <defaults>
</compile_context>

<pallas_src>
import functools

import jax
import jax.numpy as jnp
from jax.experimental import pallas as pl
from jax.experimental.pallas import tpu as pltpu


def _round_up(n: int, m: int) -> int:
    return ((n + m - 1) // m) * m


def _sublayer_connection_kernel(x_ref, a2_ref, b2_ref, w_ref, bias_ref, o_ref,
                                *, eps: float, d_valid: int):
    # x_ref: (TM, D_pad); a2/b2/bias: (1, D_pad); w: (D_pad, D_pad)
    x = x_ref[...].astype(jnp.float32)

    # --- LayerNorm, torch semantics: unbiased std, divide by (std + eps) ---
    # One-pass statistics (two independent XLU reductions over the same x).
    # Padded columns of x are zero, so sums over the padded width are exact;
    # divisors use the *valid* feature count.
    s1 = jnp.sum(x, axis=-1, keepdims=True)
    s2 = jnp.sum(x * x, axis=-1, keepdims=True)
    mean = s1 * (1.0 / d_valid)
    var_unbiased = jnp.maximum((s2 - s1 * mean) * (1.0 / (d_valid - 1)), 0.0)
    std = jnp.sqrt(var_unbiased)

    denom = std + eps
    inv = pl.reciprocal(denom, approx=True)      # EUP slot (free here)
    inv = inv * (2.0 - denom * inv)              # one Newton step -> near-exact 1/(std+eps)

    normed = (a2_ref[...].astype(jnp.float32) * (x - mean) * inv
              + b2_ref[...].astype(jnp.float32))
    # a_2/b_2 are zero in padded columns, so `normed` is exactly 0 there.

    # --- sublayer: Linear(D -> D) on the MXU (operands in W's dtype, f32 accumulation) ---
    y = jnp.dot(normed.astype(w_ref.dtype), w_ref[...],
                preferred_element_type=jnp.float32)
    y = y + bias_ref[...].astype(jnp.float32)

    # --- dropout (identity in eval) + residual ---
    # TODO(synk): training-mode stochastic dropout not implemented; eval-mode identity.
    o_ref[...] = (x + y).astype(o_ref.dtype)


def _vmem_estimate(tm: int, d_pad: int, x_itemsize: int, w_itemsize: int) -> int:
    return (2 * d_pad * d_pad * w_itemsize          # resident W (worst-case 2 buffers)
            + 2 * 2 * tm * d_pad * x_itemsize       # x + out tiles, double-buffered
            + 3 * 2 * d_pad * 4                     # a_2 / b_2 / bias
            + 4 * tm * d_pad * 4)                   # f32 temporaries inside the body


def sublayer_connection(x, a2, b2, w, bias, *, eps: float = 1e-6, tm_target: int = 512):
    """x: [B, S, D]. Returns x + Linear(LayerNorm(x)) with PyTorch LayerNorm semantics."""
    B, S, D = x.shape
    R = B * S

    # Lane-dense / MXU-aligned feature dim.
    D_pad = _round_up(max(D, 128), 128)

    # Generation-aware VMEM budget (v7x has only 64 MiB per TC).
    try:
        vmem_cap = int(pltpu.get_tpu_info().vmem_capacity_bytes)
    except Exception:  # pragma: no cover - conservative fallback
        vmem_cap = 64 * 1024 * 1024
    budget = int(vmem_cap * 0.75)

    # Pick the row-tile size: as large as possible (up to tm_target), multiple of 8,
    # shrunk until the VMEM estimate fits the budget.
    TM = min(tm_target, _round_up(R, 8))
    TM = _round_up(TM, 8)
    while TM > 8 and _vmem_estimate(TM, D_pad, x.dtype.itemsize, w.dtype.itemsize) > budget:
        TM = _round_up(TM // 2, 8)
    # TODO(synk): for very large D where W itself exceeds the VMEM budget, add a K-tiled
    # grid axis with an f32 accumulator scratch (P3 pattern) instead of a resident W.

    R_pad = _round_up(R, TM)
    grid = R_pad // TM

    est = _vmem_estimate(TM, D_pad, x.dtype.itemsize, w.dtype.itemsize)
    vmem_limit = int(min(vmem_cap, max(32 * 1024 * 1024, 2 * est)))

    # Zero-pad (padded rows/cols are sliced away; zero padding keeps stats & matmul exact).
    x2d = x.reshape(R, D)
    if R_pad != R or D_pad != D:
        x2d = jnp.pad(x2d, ((0, R_pad - R), (0, D_pad - D)))
    a2_2d = jnp.pad(a2.reshape(1, D), ((0, 0), (0, D_pad - D)))
    b2_2d = jnp.pad(b2.reshape(1, D), ((0, 0), (0, D_pad - D)))
    bias_2d = jnp.pad(bias.reshape(1, D), ((0, 0), (0, D_pad - D)))
    w_p = jnp.pad(w, ((0, D_pad - D), (0, D_pad - D)))

    kernel = functools.partial(_sublayer_connection_kernel, eps=eps, d_valid=D)

    out2d = pl.pallas_call(
        kernel,
        out_shape=jax.ShapeDtypeStruct((R_pad, D_pad), x.dtype),
        grid_spec=pltpu.PrefetchScalarGridSpec(
            num_scalar_prefetch=0,
            grid=(grid,),
            in_specs=[
                pl.BlockSpec((TM, D_pad), lambda i: (i, 0)),     # x row tile (pipelined)
                pl.BlockSpec((1, D_pad), lambda i: (0, 0)),      # a_2 (resident)
                pl.BlockSpec((1, D_pad), lambda i: (0, 0)),      # b_2 (resident)
                pl.BlockSpec((D_pad, D_pad), lambda i: (0, 0)),  # W (resident)
                pl.BlockSpec((1, D_pad), lambda i: (0, 0)),      # bias (resident)
            ],
            out_specs=pl.BlockSpec((TM, D_pad), lambda i: (i, 0)),
        ),
        compiler_params=pltpu.CompilerParams(
            dimension_semantics=("parallel",),   # row tiles are independent -> megacore
            vmem_limit_bytes=vmem_limit,
        ),
    )(x2d, a2_2d, b2_2d, w_p, bias_2d)

    return out2d[:R, :D].reshape(B, S, D)


if __name__ == "__main__":
    B, S, D = 2, 8, 32
    key = jax.random.PRNGKey(0)
    kx, kw, kb = jax.random.split(key, 3)

    x = jax.random.normal(kx, (B, S, D), dtype=jnp.float32)

    # Deterministic parameters (LayerNorm ones/zeros as in __init__; sublayer Linear small random).
    a2 = jnp.ones((D,), dtype=jnp.float32)
    b2 = jnp.zeros((D,), dtype=jnp.float32)
    w = jax.random.normal(kw, (D, D), dtype=jnp.float32) * 0.02
    bias = jax.random.normal(kb, (D,), dtype=jnp.float32) * 0.02

    out = sublayer_connection(x, a2, b2, w, bias)
    jax.block_until_ready(out)

    # Pure-JAX reference (same PyTorch-style math).
    xf = x.astype(jnp.float32)
    mean = xf.mean(-1, keepdims=True)
    std = jnp.sqrt(((xf - mean) ** 2).sum(-1, keepdims=True) / (D - 1))
    normed = a2 * (xf - mean) / (std + 1e-6) + b2
    ref = xf + (normed @ w + bias)
    assert jnp.allclose(out, ref, atol=1e-3, rtol=1e-3), "mismatch vs reference"

    print("KERNEL_OK")
</pallas_src>

<mosaic_0001>
module attributes {stable_mosaic.version = 11 : i64} {
  func.func @_sublayer_connection_kernel(%arg0: i32, %arg1: memref<16x128xf32, #tpu.memory_space<vmem>>, %arg2: memref<1x128xf32, #tpu.memory_space<vmem>>, %arg3: memref<1x128xf32, #tpu.memory_space<vmem>>, %arg4: memref<128x128xf32, #tpu.memory_space<vmem>>, %arg5: memref<1x128xf32, #tpu.memory_space<vmem>>, %arg6: memref<16x128xf32, #tpu.memory_space<vmem>>) attributes {dimension_semantics = [#tpu.dimension_semantics<parallel>], iteration_bounds = array<i64: 1>, scalar_prefetch = 0 : i64, scratch_operands = 0 : i64, tpu.core_type = #tpu.core_type<tc>, window_params = [{transform_indices = @transform_0, window_bounds = array<i64: 16, 128>}, {pipeline_mode = #tpu.pipeline_mode<synchronous>, transform_indices = @transform_1, window_bounds = array<i64: 1, 128>}, {pipeline_mode = #tpu.pipeline_mode<synchronous>, transform_indices = @transform_2, window_bounds = array<i64: 1, 128>}, {pipeline_mode = #tpu.pipeline_mode<synchronous>, transform_indices = @transform_3, window_bounds = array<i64: 128, 128>}, {pipeline_mode = #tpu.pipeline_mode<synchronous>, transform_indices = @transform_4, window_bounds = array<i64: 1, 128>}, {transform_indices = @transform_5, window_bounds = array<i64: 16, 128>}]} {
    %c0 = arith.constant 0 : index
    %c0_0 = arith.constant 0 : index
    %0 = vector.load %arg1[%c0, %c0_0] : memref<16x128xf32, #tpu.memory_space<vmem>>, vector<16x128xf32>
    %cst = arith.constant dense<0.000000e+00> : vector<16xf32>
    %1 = vector.multi_reduction <add>, %0, %cst [1] : vector<16x128xf32> to vector<16xf32>
    %2 = vector.shape_cast %1 : vector<16xf32> to vector<16x1xf32>
    %3 = arith.mulf %0, %0 : vector<16x128xf32>
    %cst_1 = arith.constant dense<0.000000e+00> : vector<16xf32>
    %4 = vector.multi_reduction <add>, %3, %cst_1 [1] : vector<16x128xf32> to vector<16xf32>
    %5 = vector.shape_cast %4 : vector<16xf32> to vector<16x1xf32>
    %cst_2 = arith.constant 3.125000e-02 : f32
    %6 = vector.broadcast %cst_2 : f32 to vector<16x1xf32>
    %7 = arith.mulf %2, %6 : vector<16x1xf32>
    %8 = arith.mulf %2, %7 : vector<16x1xf32>
    %9 = arith.subf %5, %8 : vector<16x1xf32>
    %cst_3 = arith.constant 0.0322580636 : f32
    %10 = vector.broadcast %cst_3 : f32 to vector<16x1xf32>
    %11 = arith.mulf %9, %10 : vector<16x1xf32>
    %cst_4 = arith.constant 0.000000e+00 : f32
    %12 = vector.broadcast %cst_4 : f32 to vector<16x1xf32>
    %13 = arith.maximumf %11, %12 : vector<16x1xf32>
    %14 = math.sqrt %13 : vector<16x1xf32>
    %cst_5 = arith.constant 9.99999997E-7 : f32
    %15 = vector.broadcast %cst_5 : f32 to vector<16x1xf32>
    %16 = arith.addf %14, %15 : vector<16x1xf32>
    %17 = tpu.reciprocal %16 {approx = true} : vector<16x1xf32> -> vector<16x1xf32>
    %18 = arith.mulf %16, %17 : vector<16x1xf32>
    %cst_6 = arith.constant 2.000000e+00 : f32
    %19 = vector.broadcast %cst_6 : f32 to vector<16x1xf32>
    %20 = arith.subf %19, %18 : vector<16x1xf32>
    %21 = arith.mulf %17, %20 : vector<16x1xf32>
    %c0_7 = arith.constant 0 : index
    %c0_8 = arith.constant 0 : index
    %22 = vector.load %arg2[%c0_7, %c0_8] : memref<1x128xf32, #tpu.memory_space<vmem>>, vector<1x128xf32>
    %23 = vector.broadcast %7 : vector<16x1xf32> to vector<16x128xf32>
    %24 = arith.subf %0, %23 : vector<16x128xf32>
    %25 = vector.broadcast %22 : vector<1x128xf32> to vector<16x128xf32>
    %26 = arith.mulf %25, %24 : vector<16x128xf32>
    %27 = vector.broadcast %21 : vector<16x1xf32> to vector<16x128xf32>
    %28 = arith.mulf %26, %27 : vector<16x128xf32>
    %c0_9 = arith.constant 0 : index
    %c0_10 = arith.constant 0 : index
    %29 = vector.load %arg3[%c0_9, %c0_10] : memref<1x128xf32, #tpu.memory_space<vmem>>, vector<1x128xf32>
    %30 = vector.broadcast %29 : vector<1x128xf32> to vector<16x128xf32>
    %31 = arith.addf %28, %30 : vector<16x128xf32>
    %c0_11 = arith.constant 0 : index
    %c0_12 = arith.constant 0 : index
    %32 = vector.load %arg4[%c0_11, %c0_12] : memref<128x128xf32, #tpu.memory_space<vmem>>, vector<128x128xf32>
    %cst_13 = arith.constant dense<0.000000e+00> : vector<16x128xf32>
    %33 = tpu.matmul %31, %32, %cst_13 {dimension_numbers = #tpu.dot_dimension_numbers<[1], [0], [0], [1], [0, 0, 1, 1], [], []>} : vector<16x128xf32>, vector<128x128xf32>, vector<16x128xf32> -> vector<16x128xf32>
    %c0_14 = arith.constant 0 : index
    %c0_15 = arith.constant 0 : index
    %34 = vector.load %arg5[%c0_14, %c0_15] : memref<1x128xf32, #tpu.memory_space<vmem>>, vector<1x128xf32>
    %35 = vector.broadcast %34 : vector<1x128xf32> to vector<16x128xf32>
    %36 = arith.addf %33, %35 : vector<16x128xf32>
    %37 = arith.addf %0, %36 : vector<16x128xf32>
    %c0_16 = arith.constant 0 : index
    %c0_17 = arith.constant 0 : index
    %38 = vector.load %arg6[%c0_16, %c0_17] : memref<16x128xf32, #tpu.memory_space<vmem>>, vector<16x128xf32>
    tpu.vector_store %arg6[%c0_16, %c0_17], %37 {strides = array<i32>} : memref<16x128xf32, #tpu.memory_space<vmem>>, vector<16x128xf32>,
    return
  }
  func.func @transform_0(%arg0: i32) -> (i32, i32) {
    %c0_i32 = arith.constant 0 : i32
    %c0_i32_0 = arith.constant 0 : i32
    return %arg0, %c0_i32 : i32, i32
  }
  func.func @transform_1(%arg0: i32) -> (i32, i32) {
    %c0_i32 = arith.constant 0 : i32
    %c0_i32_0 = arith.constant 0 : i32
    %c0_i32_1 = arith.constant 0 : i32
    return %c0_i32, %c0_i32_0 : i32, i32
  }
  func.func @transform_2(%arg0: i32) -> (i32, i32) {
    %c0_i32 = arith.constant 0 : i32
    %c0_i32_0 = arith.constant 0 : i32
    %c0_i32_1 = arith.constant 0 : i32
    return %c0_i32, %c0_i32_0 : i32, i32
  }
  func.func @transform_3(%arg0: i32) -> (i32, i32) {
    %c0_i32 = arith.constant 0 : i32
    %c0_i32_0 = arith.constant 0 : i32
    %c0_i32_1 = arith.constant 0 : i32
    return %c0_i32, %c0_i32_0 : i32, i32
  }
  func.func @transform_4(%arg0: i32) -> (i32, i32) {
    %c0_i32 = arith.constant 0 : i32
    %c0_i32_0 = arith.constant 0 : i32
    %c0_i32_1 = arith.constant 0 : i32
    return %c0_i32, %c0_i32_0 : i32, i32
  }
  func.func @transform_5(%arg0: i32) -> (i32, i32) {
    %c0_i32 = arith.constant 0 : i32
    %c0_i32_0 = arith.constant 0 : i32
    return %arg0, %c0_i32 : i32, i32
  }
}

</mosaic_0001>

<bundles_post_ra>
// kernel: tpu_custom_call.1
= control target key start
LH: loop header
LB: loop body
LE: loop exit
PB: predicated region body
PF: predicated region fallthrough
CT: control target
= control target key end

     0   :  { %10 = vsyncpa [#allocation3], 0  ;;  %s448_s0 = inlined_call_operand.hbm [shape: f32[16,128], index: 0, kind: input, shape index: {}]   ;;  %s449_s1 = inlined_call_operand.vmem [shape: f32[1,128], index: 1, kind: input, shape index: {}]   ;;  %s450_s2 = inlined_call_operand.vmem [shape: f32[1,128], index: 2, kind: input, shape index: {}]   ;;  %s451_s3 = inlined_call_operand.hbm [shape: f32[128,128], index: 3, kind: input, shape index: {}]   ;;  %s452_s4 = inlined_call_operand.vmem [shape: f32[1,128], index: 4, kind: input, shape index: {}]   ;;  %s453_s5 = inlined_call_operand.hbm [shape: f32[16,128], index: 5, kind: output, shape index: {}]  }
   0x1   :  { %11 = vsyncpa [#allocation6], 0 }
   0x2   :  { %12 = vsyncpa [#allocation4], 0  ;;  %s372_s18 = smov [#allocation2]  }
   0x3   :  { %s18_s19 = sshll.u32 %s372_s18, 4  ;;  %s19_s19 = int_to_ptr.vmem [resolvable:$true] %s18_s19 }
   0x4   :  { %s314_s20 = scalar_lea.vmem %s19_s19, 256  ;;  %p319_p1 = scmp.lt.s32.totalorder %s19_s19, %s19_s19 }
   0x5   :  { %p315_p0 = scmp.ne.s32.totalorder %s19_s19, %s314_s20  ;;  %p320_p2 = scmp.lt.s32.totalorder %s314_s20, %s314_s20 }
   0x7   :  { %p321_p3 = por %p320_p2, %p319_p1 }
   0x9   :  { %p322_p4 = pnand %p321_p3, %p315_p0 }
   0xb   :  { %325 = shalt.err (!%p322_p4)
}
   0xc   :  { %s373_s21 = smov 128   ;;  %s374_s22 = smov 8  }
   0xd   :  { %24 = dma.hbm_to_vmem [thread:$0]  %s448_s0, 256, %s19_s19, [#allocation3], %s373_s21, %s373_s21, %s374_s22  }
   0xe   :  { %s375_s25 = smov [#allocation5]  }
   0xf   :  { %s34_s26 = sshll.u32 %s375_s25, 4  ;;  %s35_s26 = int_to_ptr.vmem [resolvable:$true] %s34_s26 }
  0x10   :  { %s334_s27 = scalar_lea.vmem %s35_s26, 2048  ;;  %p339_p6 = scmp.lt.s32.totalorder %s35_s26, %s35_s26 }
  0x11   :  { %p335_p5 = scmp.ne.s32.totalorder %s35_s26, %s334_s27  ;;  %p340_p7 = scmp.lt.s32.totalorder %s334_s27, %s334_s27 }
  0x13   :  { %p341_p8 = por %p340_p7, %p339_p6 }
  0x15   :  { %p342_p9 = pnand %p341_p8, %p335_p5 }
  0x17   :  { %345 = shalt.err (!%p342_p9)
}
  0x18   :  { %40 = dma.hbm_to_vmem [thread:$0]  %s451_s3, 2048, %s35_s26, [#allocation6], %s373_s21, %s373_s21, %s374_s22  }
  0x19   :  { %366 = dma.done.wait [#allocation3], 256  }
  0x1a   :  { %367 = vsyncadd [#allocation3], 4294967040 }
  0x1b   :  { %368 = dma.done.wait [#allocation6], 2048  }
  0x1c   :  { %369 = vsyncadd [#allocation6], 4294965248  ;;  %v419_v0 = vld [vmem:[#allocation2] sm:$0xff]  ;;  %v424_v2 = vld [vmem:[#allocation2 + $0x8] sm:$0xff]  ;;  %s376_s8 = smov [#allocation7]  }
  0x1d   :  { %51 = vadd.xlane.f32.xlu0 %v419_v0  ;;  %v55_v1 = vmul.f32 %v419_v0, %v419_v0  ;;  %v56_v3 = vmul.f32 %v424_v2, %v424_v2  ;;  %v132_v4 = vld [vmem:[#allocation5 + $0x78] sm:$0xff]  ;;  %v131_v5 = vld [vmem:[#allocation5 + $0x70] sm:$0xff]  ;;  %v130_v6 = vld [vmem:[#allocation5 + $0x68] sm:$0xff]  ;;  %s224_s9 = sshll.u32 %s376_s8, 4  ;;  %s225_s9 = int_to_ptr.vmem [resolvable:$true] %s224_s9 }
  0x1e   :  { %258 = vmatprep.subr.mxu0 %v132_v4  ;;  %v129_v7 = vld [vmem:[#allocation5 + $0x60] sm:$0xff]  ;;  %v128_v8 = vld [vmem:[#allocation5 + $0x58] sm:$0xff]  ;;  %v127_v9 = vld [vmem:[#allocation5 + $0x50] sm:$0xff]  ;;  %p351_p11 = scmp.lt.s32.totalorder %s225_s9, %s225_s9 }
  0x1f   :  { %57 = vadd.xlane.f32.xlu1 %v55_v1  ;;  %259 = vmatpush3.msra.mxu0 %v132_v4  ;;  %v126_v10 = vld [vmem:[#allocation5 + $0x48] sm:$0xff]  ;;  %v125_v11 = vld [vmem:[#allocation5 + $0x40] sm:$0xff]  ;;  %v124_v12 = vld [vmem:[#allocation5 + $0x38] sm:$0xff] }
  0x20   :  { %260 = vmatprep.subr.mxu0 %v131_v5  ;;  %v123_v13 = vld [vmem:[#allocation5 + $0x30] sm:$0xff]  ;;  %v122_v14 = vld [vmem:[#allocation5 + $0x28] sm:$0xff]  ;;  %v121_v15 = vld [vmem:[#allocation5 + $0x20] sm:$0xff] }
  0x21   :  { %53 = vadd.xlane.f32.xlu0 %v424_v2  ;;  %261 = vmatpush3.msra.mxu0 %v131_v5  ;;  %v120_v16 = vld [vmem:[#allocation5 + $0x18] sm:$0xff]  ;;  %v119_v17 = vld [vmem:[#allocation5 + $0x10] sm:$0xff]  ;;  %v118_v18 = vld [vmem:[#allocation5 + $0x8] sm:$0xff] }
  0x22   :  { %262 = vmatprep.subr.mxu0 %v130_v6  ;;  %v117_v19 = vld [vmem:[#allocation5] sm:$0xff]  ;;  %v237_v49 = vld [vmem:[%s449_s1] ss:$0 sm:$0xff] }
  0x23   :  { %59 = vadd.xlane.f32.xlu1 %v56_v3  ;;  %263 = vmatpush3.msra.mxu0 %v130_v6  ;;  %v238_v56 = vld [vmem:[%s450_s2] ss:$0 sm:$0xff]  ;;  %s346_s2 = scalar_lea.vmem %s225_s9, 256 }
  0x24   :  { %264 = vmatprep.subr.mxu0 %v129_v7  ;;  %v239_v1 = vld [vmem:[%s452_s4] ss:$0 sm:$0xff]  ;;  %p347_p10 = scmp.ne.s32.totalorder %s225_s9, %s346_s2  ;;  %p352_p12 = scmp.lt.s32.totalorder %s346_s2, %s346_s2 }
  0x25   :  { %265 = vmatpush3.msra.mxu0 %v129_v7 }
  0x26   :  { %266 = vmatprep.subr.mxu0 %v128_v8  ;;  %p353_p13 = por %p352_p12, %p351_p11 }
  0x27   :  { %267 = vmatpush3.msra.mxu0 %v128_v8 }
  0x28   :  { %268 = vmatprep.subr.mxu0 %v127_v9  ;;  %p354_p0 = pnand %p353_p13, %p347_p10 }
  0x29   :  { %269 = vmatpush3.msra.mxu0 %v127_v9 }
  0x2a   :  { %270 = vmatprep.subr.mxu0 %v126_v10 }
  0x2b   :  { %271 = vmatpush3.msra.mxu0 %v126_v10 }
  0x2c   :  { %272 = vmatprep.subr.mxu0 %v125_v11 }
  0x2d   :  { %273 = vmatpush3.msra.mxu0 %v125_v11 }
  0x2e   :  { %274 = vmatprep.subr.mxu0 %v124_v12 }
  0x2f   :  { %275 = vmatpush3.msra.mxu0 %v124_v12 }
  0x30   :  { %276 = vmatprep.subr.mxu0 %v123_v13 }
  0x31   :  { %277 = vmatpush3.msra.mxu0 %v123_v13 }
  0x32   :  { %278 = vmatprep.subr.mxu0 %v122_v14 }
  0x33   :  { %279 = vmatpush3.msra.mxu0 %v122_v14 }
  0x34   :  { %280 = vmatprep.subr.mxu0 %v121_v15 }
  0x35   :  { %281 = vmatpush3.msra.mxu0 %v121_v15 }
  0x36   :  { %282 = vmatprep.subr.mxu0 %v120_v16 }
  0x37   :  { %283 = vmatpush3.msra.mxu0 %v120_v16 }
  0x38   :  { %284 = vmatprep.subr.mxu0 %v119_v17 }
  0x39   :  { %285 = vmatpush3.msra.mxu0 %v119_v17 }
  0x3a   :  { %286 = vmatprep.subr.mxu0 %v118_v18 }
  0x3b   :  { %287 = vmatpush3.msra.mxu0 %v118_v18 }
  0x3c   :  { %288 = vmatprep.subr.mxu0 %v117_v19 }
  0x3d   :  { %289 = vmatpush3.msra.mxu0 %v117_v19 }
  0xa6   :  { %v52_v20 = vpop.xlane.xlu0 %51 }
  0xa7   :  { %v61_v21 = vmul.f32 0.03125, %v52_v20 }
  0xa8   :  { %v58_v22 = vpop.xlane.xlu1 %57 }
  0xa9   :  { %v63_v23 = vmul.f32 %v61_v21, %v52_v20  ;;  %v96_v47 = vsub.f32 %v419_v0, %v61_v21 }
  0xaa   :  { %v54_v24 = vpop.xlane.xlu0 %53 }
  0xab   :  { %v62_v25 = vmul.f32 0.03125, %v54_v24  ;;  %v65_v26 = vsub.f32 %v58_v22, %v63_v23  ;;  %v104_v55 = vmul.f32 %v237_v49, %v96_v47 }
  0xac   :  { %v60_v27 = vpop.xlane.xlu1 %59 }
  0xad   :  { %v64_v28 = vmul.f32 %v62_v25, %v54_v24  ;;  %v67_v29 = vmul.f32 0.032258064, %v65_v26  ;;  %v97_v52 = vsub.f32 %v424_v2, %v62_v25 }
  0xaf   :  { %v69_v30 = vmax.f32 %v67_v29, 0.0  ;;  %v66_v31 = vsub.f32 %v60_v27, %v64_v28  ;;  %v105_v59 = vmul.f32 %v237_v49, %v97_v52 }
  0xb1   :  { %298 = vrsqrt.f32 %v69_v30  ;;  %v68_v32 = vmul.f32 0.032258064, %v66_v31  ;;  %vm73_vm0 = vcmp.eq.f32.partialorder %v69_v30, inf  ;;  %v76_v36 = vand.u32 2147483648, %v69_v30 }
  0xb2   :  { %vm75_vm1 = vcmp.eq.f32.partialorder %v69_v30, 0.0 }
  0xb3   :  { %v70_v33 = vmax.f32 %v68_v32, 0.0 }
  0xb5   :  { %300 = vrsqrt.f32 %v70_v33  ;;  %vm80_vm2 = vcmp.eq.f32.partialorder %v70_v33, inf  ;;  %v83_v42 = vand.u32 2147483648, %v70_v33  ;;  %vm82_vm3 = vcmp.eq.f32.partialorder %v70_v33, 0.0 }
  0xbe   :  { %v299_v34 = vpop.eup %298 }
  0xbf   :  { %v72_v35 = vmul.f32 %v299_v34, %v69_v30 }
  0xc1   :  { %v74_v37 = vsel %vm73_vm0, %v69_v30, %v72_v35 }
  0xc2   :  { %v301_v38 = vpop.eup %300  ;;  %v77_v39 = vsel %vm75_vm1, %v76_v36, %v74_v37 }
  0xc3   :  { %v79_v40 = vmul.f32 %v301_v38, %v70_v33  ;;  %v85_v41 = vadd.f32 1e-06, %v77_v39 }
  0xc5   :  { %v81_v43 = vsel %vm80_vm2, %v70_v33, %v79_v40  ;;  %302 = vrcp.f32 %v85_v41 }
  0xc6   :  { %v84_v44 = vsel %vm82_vm3, %v83_v42, %v81_v43 }
  0xc7   :  { %v86_v45 = vadd.f32 1e-06, %v84_v44 }
  0xc9   :  { %304 = vrcp.f32 %v86_v45 }
  0xd2   :  { %v303_v46 = vpop.eup %302 }
  0xd3   :  { %v89_v48 = vmul.f32 %v303_v46, %v85_v41 }
  0xd5   :  { %v91_v50 = vsub.f32 2.0, %v89_v48 }
  0xd6   :  { %v305_v51 = vpop.eup %304 }
  0xd7   :  { %v90_v53 = vmul.f32 %v305_v51, %v86_v45  ;;  %v93_v54 = vmul.f32 %v303_v46, %v91_v50 }
  0xd9   :  { %v92_v57 = vsub.f32 2.0, %v90_v53  ;;  %v106_v58 = vmul.f32 %v104_v55, %v93_v54 }
  0xdb   :  { %v94_v60 = vmul.f32 %v305_v51, %v92_v57  ;;  %v115_v61 = vadd.f32 %v238_v56, %v106_v58 }
  0xdd   :  { %v107_v62 = vmul.f32 %v105_v59, %v94_v60  ;;  %290 = vmatprep.mubr.f32.mxu0 %v115_v61 }
  0xdf   :  { %v116_v63 = vadd.f32 %v238_v56, %v107_v62 }
  0xe1   :  { %291 = vmatmul.mubr.f32.vlgmr.msra.gmra.mxu0 %v116_v63 }
 0x1a1   :  { %v292_v3 = vpop.f32.mrf.mxu0 }
 0x1a2   :  { %v212_v4 = vadd.f32 %v292_v3, %v239_v1 }
 0x1a3   :  { %v206_v5 = vpop.f32.mrf.mxu0 }
 0x1a4   :  { %v216_v6 = vadd.f32 %v212_v4, %v424_v2  ;;  %v207_v7 = vadd.f32 %v239_v1, %v206_v5 }
 0x1a6   :  { %218 = vst [vmem:[#allocation7 + $0x8] sm:$0xff] %v216_v6  ;;  %v215_v8 = vadd.f32 %v207_v7, %v419_v0 }
 0x1a8   :  { %217 = vst [vmem:[#allocation7] sm:$0xff] %v215_v8 }
 0x1a9   :  { %357 = shalt.err (!%p354_p0)
}
 0x1aa   :  { %230 = dma.vmem_to_hbm [thread:$0]  %s225_s9, 256, %s453_s5, [#allocation4], %s373_s21, %s373_s21, %s374_s22  }
 0x1ab   :  { %370 = dma.done.wait [#allocation4], 256  }
 0x1ac   :  { %371 = vsyncadd [#allocation4], 4294967040 }
 0x1ad   :  { %234 = vsyncpa [#allocation3], 1 }
 0x1ae   :  { %235 = vsyncpa [#allocation6], 1 }
 0x1af   :  { %236 = vsyncpa [#allocation4], 1 }

</bundles_post_ra>
